<compile_context>
chip_gen: v7x
topology: tpu7x:2x2x1
jax: 0.10.0
libtpu: 0.0.40
codegen_flags: <defaults>
</compile_context>

<pallas_src>
import functools

import jax
import jax.numpy as jnp
from jax.experimental import pallas as pl
from jax.experimental.pallas import tpu as pltpu

LANE = 128
N_LAYERS = 4


def _round_up(n, m=LANE):
    return ((n + m - 1) // m) * m


# ---------------------------------------------------------------------------
# Kernel
# ---------------------------------------------------------------------------
def qnet_kernel(x_ref, w_ref, b_ref, o_ref, *, in_size, out_size):
    """x_ref: [tb, in_size] (f32), w_ref: [4, D, D] (compute dtype),
    b_ref: [4, 1, D] f32, o_ref: [tb, out_size] f32."""
    cdt = w_ref.dtype  # MXU operand dtype (bf16 default / f32); accumulation is f32.

    # Cast the narrow input tile to the MXU operand dtype in-VMEM (tiny VPU op).
    # Only the first `in_size` rows of the layer-0 weight slab participate, so
    # x never has to be padded out to 128 lanes.
    x = x_ref[...].astype(cdt)
    h = jnp.dot(x, w_ref[0, :in_size, :], preferred_element_type=jnp.float32)
    h = jnp.maximum(h + b_ref[0], 0.0)

    h = jnp.dot(h.astype(cdt), w_ref[1], preferred_element_type=jnp.float32)
    h = jnp.maximum(h + b_ref[1], 0.0)

    h = jnp.dot(h.astype(cdt), w_ref[2], preferred_element_type=jnp.float32)
    h = jnp.maximum(h + b_ref[2], 0.0)

    out = jnp.dot(h.astype(cdt), w_ref[3], preferred_element_type=jnp.float32) + b_ref[3]
    # Narrow store: only the real output columns go back to HBM.
    o_ref[...] = out[:, :out_size]


# ---------------------------------------------------------------------------
# Parameter packing: 8 tiny arrays -> 1 weight slab + 1 bias slab, zero-padded
# ---------------------------------------------------------------------------
def pack_params(params, compute_dtype=jnp.bfloat16):
    ws = [params[f"w{i}"] for i in range(1, N_LAYERS + 1)]
    bs = [params[f"b{i}"] for i in range(1, N_LAYERS + 1)]
    D = _round_up(max(max(w.shape) for w in ws))

    w_slab = jnp.zeros((N_LAYERS, D, D), jnp.float32)
    b_slab = jnp.zeros((N_LAYERS, 1, D), jnp.float32)
    for l, (w, b) in enumerate(zip(ws, bs)):
        w_slab = w_slab.at[l, : w.shape[0], : w.shape[1]].set(w)
        b_slab = b_slab.at[l, :, : b.shape[1]].set(b)

    # Zero padding guarantees padded lanes stay exactly 0 through the ReLU chain.
    w_slab = w_slab.astype(compute_dtype)  # bf16 = MXU fast path (v7x has no f32 MXU)
    meta = dict(D=D, in_size=ws[0].shape[0], out_size=ws[-1].shape[1])
    return w_slab, b_slab, meta


def _pick_tb(B):
    """Rows per grid tile: prefer >=2 tiles (v7x: shard across both TCs) with
    at most 1024 rows each; otherwise a single full-batch tile."""
    for cand in (1024, 512, 256, 128, 64, 32, 16, 8):
        if cand < B and B % cand == 0:
            return cand
    return B  # grid=(1,); legal since the block equals the full array dims.


# ---------------------------------------------------------------------------
# Wrapper
# ---------------------------------------------------------------------------
def qnetwork_forward(x, w_slab, b_slab, meta, *, tb=None):
    """x: [B, input_size] f32.  Returns [B, output_size] f32."""
    B, in_size = x.shape
    assert in_size == meta["in_size"]
    D = meta["D"]
    out_size = meta["out_size"]

    if tb is None:
        tb = _pick_tb(B)
    assert B % tb == 0

    kernel = functools.partial(qnet_kernel, in_size=in_size, out_size=out_size)

    cost = pl.CostEstimate(
        flops=2 * B * D * D * N_LAYERS,
        transcendentals=0,
        bytes_accessed=int(
            x.size * x.dtype.itemsize
            + B * out_size * 4
            + w_slab.size * w_slab.dtype.itemsize
            + b_slab.size * b_slab.dtype.itemsize
        ),
    )

    # Note: the weight/bias slabs are grid-invariant (constant index_map), so
    # Pallas fetches them once and does not re-DMA them between consecutive
    # grid steps; default double-buffering of the ~128-256 KB slab is harmless.
    return pl.pallas_call(
        kernel,
        out_shape=jax.ShapeDtypeStruct((B, out_size), jnp.float32),
        grid_spec=pltpu.PrefetchScalarGridSpec(
            num_scalar_prefetch=0,
            grid=(B // tb,),
            in_specs=[
                # x tile: last dim equals the full array dim (<128) -> legal, unpadded.
                pl.BlockSpec((tb, in_size), lambda i: (i, 0)),
                pl.BlockSpec((N_LAYERS, D, D), lambda i: (0, 0, 0)),   # weight slab
                pl.BlockSpec((N_LAYERS, 1, D), lambda i: (0, 0, 0)),   # bias slab
            ],
            # Narrow output block: last dim equals the full array dim.
            out_specs=pl.BlockSpec((tb, out_size), lambda i: (i, 0)),
        ),
        compiler_params=pltpu.CompilerParams(
            dimension_semantics=("parallel",),
            vmem_limit_bytes=32 * 1024 * 1024,
        ),
        cost_estimate=cost,
    )(x, w_slab, b_slab)


# ---------------------------------------------------------------------------
# Init + pure-JAX reference (matches the PyTorch module semantics)
# ---------------------------------------------------------------------------
def init_params(key, input_size, h1, h2, output_size):
    """nn.Linear-style init: U(-1/sqrt(fan_in), 1/sqrt(fan_in))."""

    def linear(k, fan_in, fan_out):
        kw, kb = jax.random.split(k)
        bound = 1.0 / jnp.sqrt(jnp.float32(fan_in))
        w = jax.random.uniform(kw, (fan_in, fan_out), jnp.float32, -bound, bound)
        b = jax.random.uniform(kb, (1, fan_out), jnp.float32, -bound, bound)
        return w, b

    k1, k2, k3, k4 = jax.random.split(key, 4)
    w1, b1 = linear(k1, input_size, h1)
    w2, b2 = linear(k2, h1, h2)
    w3, b3 = linear(k3, h2, h2)
    w4, b4 = linear(k4, h2, output_size)
    return dict(w1=w1, b1=b1, w2=w2, b2=b2, w3=w3, b3=b3, w4=w4, b4=b4)


def qnetwork_ref(x, p):
    h = jnp.maximum(x @ p["w1"] + p["b1"], 0.0)
    h = jnp.maximum(h @ p["w2"] + p["b2"], 0.0)
    h = jnp.maximum(h @ p["w3"] + p["b3"], 0.0)
    return h @ p["w4"] + p["b4"]


# TODO(synk): QNetwork.save() is host-side checkpoint I/O (torch.save); no kernel equivalent.

if __name__ == "__main__":
    input_size, hidden_one, hidden_two, output_size = 16, 32, 32, 4
    batch = 8

    key = jax.random.PRNGKey(0)
    kx, kp = jax.random.split(key)
    x = jax.random.normal(kx, (batch, input_size), jnp.float32)
    params = init_params(kp, input_size, hidden_one, hidden_two, output_size)
    ref = qnetwork_ref(x, params)

    # f32 MXU operands: bit-for-bit semantics of the original f32 module.
    w32, b32, meta32 = pack_params(params, compute_dtype=jnp.float32)
    out32 = jax.block_until_ready(qnetwork_forward(x, w32, b32, meta32))
    assert out32.shape == (batch, output_size)
    assert jnp.allclose(out32, ref, atol=1e-4, rtol=1e-4), "f32 path mismatch vs reference"

    # Default path: bf16 MXU operands, f32 accumulation / bias / ReLU.
    w_bf, b_bf, meta_bf = pack_params(params)
    out_bf = jax.block_until_ready(qnetwork_forward(x, w_bf, b_bf, meta_bf))
    assert out_bf.shape == (batch, output_size)
    assert jnp.allclose(out_bf, ref, atol=5e-2, rtol=5e-2), "bf16 path mismatch vs reference"

    print("KERNEL_OK")
</pallas_src>

<mosaic_0001>
module attributes {stable_mosaic.version = 11 : i64} {
  func.func @qnet_kernel(%arg0: i32, %arg1: memref<8x16xf32, #tpu.memory_space<vmem>>, %arg2: memref<4x128x128xf32, #tpu.memory_space<vmem>>, %arg3: memref<4x1x128xf32, #tpu.memory_space<vmem>>, %arg4: memref<8x4xf32, #tpu.memory_space<vmem>>) attributes {dimension_semantics = [#tpu.dimension_semantics<parallel>], iteration_bounds = array<i64: 1>, scalar_prefetch = 0 : i64, scratch_operands = 0 : i64, tpu.core_type = #tpu.core_type<tc>, window_params = [{transform_indices = @transform_0, window_bounds = array<i64: 8, 16>}, {pipeline_mode = #tpu.pipeline_mode<synchronous>, transform_indices = @transform_1, window_bounds = array<i64: 4, 128, 128>}, {pipeline_mode = #tpu.pipeline_mode<synchronous>, transform_indices = @transform_2, window_bounds = array<i64: 4, 1, 128>}, {transform_indices = @transform_3, window_bounds = array<i64: 8, 4>}]} {
    %c0 = arith.constant 0 : index
    %c0_0 = arith.constant 0 : index
    %0 = vector.load %arg1[%c0, %c0_0] : memref<8x16xf32, #tpu.memory_space<vmem>>, vector<8x16xf32>
    %c0_1 = arith.constant 0 : index
    %c0_2 = arith.constant 0 : index
    %c0_3 = arith.constant 0 : index
    %1 = vector.load %arg2[%c0_1, %c0_2, %c0_3] : memref<4x128x128xf32, #tpu.memory_space<vmem>>, vector<1x16x128xf32>
    %2 = vector.shape_cast %1 : vector<1x16x128xf32> to vector<16x128xf32>
    %cst = arith.constant dense<0.000000e+00> : vector<8x128xf32>
    %3 = tpu.matmul %0, %2, %cst {dimension_numbers = #tpu.dot_dimension_numbers<[1], [0], [0], [1], [0, 0, 1, 1], [], []>} : vector<8x16xf32>, vector<16x128xf32>, vector<8x128xf32> -> vector<8x128xf32>
    %c0_4 = arith.constant 0 : index
    %c0_5 = arith.constant 0 : index
    %c0_6 = arith.constant 0 : index
    %4 = vector.load %arg3[%c0_4, %c0_5, %c0_6] : memref<4x1x128xf32, #tpu.memory_space<vmem>>, vector<1x1x128xf32>
    %5 = vector.shape_cast %4 : vector<1x1x128xf32> to vector<1x128xf32>
    %6 = vector.broadcast %5 : vector<1x128xf32> to vector<8x128xf32>
    %7 = arith.addf %3, %6 : vector<8x128xf32>
    %cst_7 = arith.constant 0.000000e+00 : f32
    %8 = vector.broadcast %cst_7 : f32 to vector<8x128xf32>
    %9 = arith.maximumf %7, %8 : vector<8x128xf32>
    %c1 = arith.constant 1 : index
    %c0_8 = arith.constant 0 : index
    %c0_9 = arith.constant 0 : index
    %10 = vector.load %arg2[%c1, %c0_8, %c0_9] : memref<4x128x128xf32, #tpu.memory_space<vmem>>, vector<1x128x128xf32>
    %11 = vector.shape_cast %10 : vector<1x128x128xf32> to vector<128x128xf32>
    %cst_10 = arith.constant dense<0.000000e+00> : vector<8x128xf32>
    %12 = tpu.matmul %9, %11, %cst_10 {dimension_numbers = #tpu.dot_dimension_numbers<[1], [0], [0], [1], [0, 0, 1, 1], [], []>} : vector<8x128xf32>, vector<128x128xf32>, vector<8x128xf32> -> vector<8x128xf32>
    %c1_11 = arith.constant 1 : index
    %c0_12 = arith.constant 0 : index
    %c0_13 = arith.constant 0 : index
    %13 = vector.load %arg3[%c1_11, %c0_12, %c0_13] : memref<4x1x128xf32, #tpu.memory_space<vmem>>, vector<1x1x128xf32>
    %14 = vector.shape_cast %13 : vector<1x1x128xf32> to vector<1x128xf32>
    %15 = vector.broadcast %14 : vector<1x128xf32> to vector<8x128xf32>
    %16 = arith.addf %12, %15 : vector<8x128xf32>
    %cst_14 = arith.constant 0.000000e+00 : f32
    %17 = vector.broadcast %cst_14 : f32 to vector<8x128xf32>
    %18 = arith.maximumf %16, %17 : vector<8x128xf32>
    %c2 = arith.constant 2 : index
    %c0_15 = arith.constant 0 : index
    %c0_16 = arith.constant 0 : index
    %19 = vector.load %arg2[%c2, %c0_15, %c0_16] : memref<4x128x128xf32, #tpu.memory_space<vmem>>, vector<1x128x128xf32>
    %20 = vector.shape_cast %19 : vector<1x128x128xf32> to vector<128x128xf32>
    %cst_17 = arith.constant dense<0.000000e+00> : vector<8x128xf32>
    %21 = tpu.matmul %18, %20, %cst_17 {dimension_numbers = #tpu.dot_dimension_numbers<[1], [0], [0], [1], [0, 0, 1, 1], [], []>} : vector<8x128xf32>, vector<128x128xf32>, vector<8x128xf32> -> vector<8x128xf32>
    %c2_18 = arith.constant 2 : index
    %c0_19 = arith.constant 0 : index
    %c0_20 = arith.constant 0 : index
    %22 = vector.load %arg3[%c2_18, %c0_19, %c0_20] : memref<4x1x128xf32, #tpu.memory_space<vmem>>, vector<1x1x128xf32>
    %23 = vector.shape_cast %22 : vector<1x1x128xf32> to vector<1x128xf32>
    %24 = vector.broadcast %23 : vector<1x128xf32> to vector<8x128xf32>
    %25 = arith.addf %21, %24 : vector<8x128xf32>
    %cst_21 = arith.constant 0.000000e+00 : f32
    %26 = vector.broadcast %cst_21 : f32 to vector<8x128xf32>
    %27 = arith.maximumf %25, %26 : vector<8x128xf32>
    %c3 = arith.constant 3 : index
    %c0_22 = arith.constant 0 : index
    %c0_23 = arith.constant 0 : index
    %28 = vector.load %arg2[%c3, %c0_22, %c0_23] : memref<4x128x128xf32, #tpu.memory_space<vmem>>, vector<1x128x128xf32>
    %29 = vector.shape_cast %28 : vector<1x128x128xf32> to vector<128x128xf32>
    %cst_24 = arith.constant dense<0.000000e+00> : vector<8x128xf32>
    %30 = tpu.matmul %27, %29, %cst_24 {dimension_numbers = #tpu.dot_dimension_numbers<[1], [0], [0], [1], [0, 0, 1, 1], [], []>} : vector<8x128xf32>, vector<128x128xf32>, vector<8x128xf32> -> vector<8x128xf32>
    %c3_25 = arith.constant 3 : index
    %c0_26 = arith.constant 0 : index
    %c0_27 = arith.constant 0 : index
    %31 = vector.load %arg3[%c3_25, %c0_26, %c0_27] : memref<4x1x128xf32, #tpu.memory_space<vmem>>, vector<1x1x128xf32>
    %32 = vector.shape_cast %31 : vector<1x1x128xf32> to vector<1x128xf32>
    %33 = vector.broadcast %32 : vector<1x128xf32> to vector<8x128xf32>
    %34 = arith.addf %30, %33 : vector<8x128xf32>
    %35 = vector.extract_strided_slice %34 {offsets = [0, 0], sizes = [8, 4], strides = [1, 1]} : vector<8x128xf32> to vector<8x4xf32>
    %c0_28 = arith.constant 0 : index
    %c0_29 = arith.constant 0 : index
    %36 = vector.load %arg4[%c0_28, %c0_29] : memref<8x4xf32, #tpu.memory_space<vmem>>, vector<8x4xf32>
    tpu.vector_store %arg4[%c0_28, %c0_29], %35 {strides = array<i32>} : memref<8x4xf32, #tpu.memory_space<vmem>>, vector<8x4xf32>,
    return
  }
  func.func @transform_0(%arg0: i32) -> (i32, i32) {
    %c0_i32 = arith.constant 0 : i32
    %c0_i32_0 = arith.constant 0 : i32
    return %arg0, %c0_i32 : i32, i32
  }
  func.func @transform_1(%arg0: i32) -> (i32, i32, i32) {
    %c0_i32 = arith.constant 0 : i32
    %c0_i32_0 = arith.constant 0 : i32
    %c0_i32_1 = arith.constant 0 : i32
    %c0_i32_2 = arith.constant 0 : i32
    return %c0_i32, %c0_i32_0, %c0_i32_1 : i32, i32, i32
  }
  func.func @transform_2(%arg0: i32) -> (i32, i32, i32) {
    %c0_i32 = arith.constant 0 : i32
    %c0_i32_0 = arith.constant 0 : i32
    %c0_i32_1 = arith.constant 0 : i32
    %c0_i32_2 = arith.constant 0 : i32
    return %c0_i32, %c0_i32_0, %c0_i32_1 : i32, i32, i32
  }
  func.func @transform_3(%arg0: i32) -> (i32, i32) {
    %c0_i32 = arith.constant 0 : i32
    %c0_i32_0 = arith.constant 0 : i32
    return %arg0, %c0_i32 : i32, i32
  }
}

</mosaic_0001>

<bundles_post_ra>
// kernel: tpu_custom_call.1
= control target key start
LH: loop header
LB: loop body
LE: loop exit
PB: predicated region body
PF: predicated region fallthrough
CT: control target
= control target key end

     0   :  { %8 = vsyncpa [#allocation3], 0  ;;  %s830_s0 = inlined_call_operand.hbm [shape: f32[8,16], index: 0, kind: input, shape index: {}]   ;;  %s831_s1 = inlined_call_operand.hbm [shape: f32[4,128,128], index: 1, kind: input, shape index: {}]   ;;  %s832_s2 = inlined_call_operand.vmem [shape: f32[4,1,128], index: 2, kind: input, shape index: {}]   ;;  %s833_s3 = inlined_call_operand.vmem [shape: f32[8,4], index: 3, kind: output, shape index: {}]  }
   0x1   :  { %9 = vsyncpa [#allocation5], 0  ;;  %s724_s12 = smov [#allocation2]   ;;  %s725_s14 = smov [#allocation4]  }
   0x2   :  { %s16_s13 = sshll.u32 %s724_s12, 4  ;;  %s25_s15 = sshll.u32 %s725_s14, 4  ;;  %s17_s13 = int_to_ptr.vmem [resolvable:$true] %s16_s13  ;;  %s751_s15 = int_to_ptr.vmem [resolvable:$true] %s25_s15 }
   0x3   :  { %s676_s18 = scalar_lea.hbm %s830_s0, 128 }
   0x4   :  { %p677_p0 = scmp.ne.s32.totalorder %s830_s0, %s676_s18  ;;  %p680_p1 = scmp.lt.u32.totalorder %s676_s18, %s830_s0 }
   0x6   :  { %p682_p2 = pnand %p680_p1, %p677_p0 }
   0x8   :  { %685 = shalt.err (!%p682_p2)
}
   0x9   :  { %s686_s23 = scalar_lea.vmem %s17_s13, 128  ;;  %p691_p4 = scmp.lt.s32.totalorder %s17_s13, %s17_s13 }
   0xa   :  { %p687_p3 = scmp.ne.s32.totalorder %s17_s13, %s686_s23  ;;  %p692_p5 = scmp.lt.s32.totalorder %s686_s23, %s686_s23 }
   0xc   :  { %p693_p6 = por %p692_p5, %p691_p4 }
   0xe   :  { %p694_p7 = pnand %p693_p6, %p687_p3 }
  0x10   :  { %697 = shalt.err (!%p694_p7)
}
  0x11   :  { %19 = dma.hbm_to_vmem [thread:$0]  %s830_s0, 128, %s17_s13, [#allocation3]  }
  0x12   :  { %s698_s28 = scalar_lea.hbm %s831_s1, 8192 }
  0x13   :  { %p699_p8 = scmp.ne.s32.totalorder %s831_s1, %s698_s28  ;;  %p702_p9 = scmp.lt.u32.totalorder %s698_s28, %s831_s1 }
  0x15   :  { %p704_p10 = pnand %p702_p9, %p699_p8 }
  0x17   :  { %707 = shalt.err (!%p704_p10)
}
  0x18   :  { %s708_s6 = scalar_lea.vmem %s751_s15, 8192  ;;  %p713_p12 = scmp.lt.s32.totalorder %s751_s15, %s751_s15 }
  0x19   :  { %p709_p11 = scmp.ne.s32.totalorder %s751_s15, %s708_s6  ;;  %p714_p13 = scmp.lt.s32.totalorder %s708_s6, %s708_s6 }
  0x1b   :  { %p715_p0 = por %p714_p13, %p713_p12 }
  0x1d   :  { %p716_p1 = pnand %p715_p0, %p709_p11 }
  0x1f   :  { %719 = shalt.err (!%p716_p1)
}
  0x20   :  { %s726_s0 = smov 128   ;;  %s727_s7 = smov 8  }
  0x21   :  { %31 = dma.hbm_to_vmem [thread:$0]  %s831_s1, 8192, %s751_s15, [#allocation5], %s726_s0, %s726_s0, %s727_s7  }
  0x22   :  { %720 = dma.done.wait [#allocation3], 128  }
  0x23   :  { %721 = vsyncadd [#allocation3], 4294967168 }
  0x24   :  { %722 = dma.done.wait [#allocation5], 8192  }
  0x25   :  { %723 = vsyncadd [#allocation5], 4294959104  ;;  %v728_v0 = vmov 0.0|0.0   ;;  %vm729_vm0 = vmmov 0   ;;  %v730_v1 = vmov 0.0   ;;  %v41_v2 = vld [vmem:[#allocation4] sm:$0xff] }
  0x26   :  { %594 = vmatprep.subr.bf16.mxu0 %v728_v0  ;;  %486 = vmatprep.mubr.msk.f32.mxu0 %vm729_vm0, %v730_v1  ;;  %v42_v3 = vld [vmem:[#allocation4 + $0x8] sm:$0xff]  ;;  %v126_v5 = vld [vmem:[#allocation4 + $0x80] sm:$0xff]  ;;  %v128_v7 = vld [vmem:[#allocation4 + $0x90] sm:$0xff]  ;;  %vm50_vm1 = vcmask 130048   ;;  %vm412_vm2 = vcmask 31744  }
  0x27   :  { %597 = vmatprep.subr.bf16.mxu1 %v728_v0  ;;  %521 = vmatprep.mubr.msk.f32.mxu1 %vm729_vm0, %v730_v1  ;;  %v595_v4 = vpack.c.bf16 %v42_v3, %v41_v2  ;;  %v127_v6 = vld [vmem:[#allocation4 + $0x88] sm:$0xff]  ;;  %v129_v9 = vld [vmem:[#allocation4 + $0x98] sm:$0xff]  ;;  %v130_v12 = vld [vmem:[#allocation4 + $0xa0] sm:$0xff] }
  0x28   :  { %v598_v8 = vpack.c.bf16 %v127_v6, %v126_v5  ;;  %v40_v10 = vld [vmem:[#allocation2] sm:$0xff]  ;;  %v601_v11 = vpack.c.bf16 %v129_v9, %v128_v7  ;;  %v131_v13 = vld [vmem:[#allocation4 + $0xa8] sm:$0xff]  ;;  %v132_v15 = vld [vmem:[#allocation4 + $0xb0] sm:$0xff] }
  0x29   :  { %596 = vmatpush3.bf16.msra.mxu0 %v595_v4  ;;  %v604_v14 = vpack.c.bf16 %v131_v13, %v130_v12  ;;  %v133_v16 = vld [vmem:[#allocation4 + $0xb8] sm:$0xff]  ;;  %v134_v18 = vld [vmem:[#allocation4 + $0xc0] sm:$0xff]  ;;  %v135_v19 = vld [vmem:[#allocation4 + $0xc8] sm:$0xff] }
  0x2a   :  { %599 = vmatpush3.bf16.msra.mxu1 %v598_v8  ;;  %621 = vmatprep.subr.bf16.mxu0 %v728_v0  ;;  %v607_v17 = vpack.c.bf16 %v133_v16, %v132_v15  ;;  %v610_v20 = vpack.c.bf16 %v135_v19, %v134_v18  ;;  %v136_v21 = vld [vmem:[#allocation4 + $0xd0] sm:$0xff]  ;;  %v137_v22 = vld [vmem:[#allocation4 + $0xd8] sm:$0xff]  ;;  %v138_v24 = vld [vmem:[#allocation4 + $0xe0] sm:$0xff] }
  0x2b   :  { %600 = vmatprep.subr.bf16.mxu1 %v728_v0  ;;  %v613_v23 = vpack.c.bf16 %v137_v22, %v136_v21  ;;  %v139_v25 = vld [vmem:[#allocation4 + $0xe8] sm:$0xff]  ;;  %v140_v27 = vld [vmem:[#allocation4 + $0xf0] sm:$0xff]  ;;  %v141_v28 = vld [vmem:[#allocation4 + $0xf8] sm:$0xff] }
  0x2c   :  { %487 = vmatmul.mubr.msk.f32.vlgmr.msra.gmra.mrb[0].mxu0 %vm50_vm1, %v40_v10  ;;  %v616_v26 = vpack.c.bf16 %v139_v25, %v138_v24  ;;  %v619_v29 = vpack.c.bf16 %v141_v28, %v140_v27  ;;  %v222_v30 = vld [vmem:[#allocation4 + $0x100] sm:$0xff]  ;;  %v223_v31 = vld [vmem:[#allocation4 + $0x108] sm:$0xff]  ;;  %v224_v32 = vld [vmem:[#allocation4 + $0x110] sm:$0xff] }
  0x2d   :  { %556 = vmatprep.mubr.msk.f32.mxu0 %vm729_vm0, %v730_v1  ;;  %v622_v33 = vpack.c.bf16 %v223_v31, %v222_v30  ;;  %v225_v34 = vld [vmem:[#allocation4 + $0x118] sm:$0xff]  ;;  %v226_v36 = vld [vmem:[#allocation4 + $0x120] sm:$0xff]  ;;  %v227_v37 = vld [vmem:[#allocation4 + $0x128] sm:$0xff] }
  0x2e   :  { %602 = vmatpush3.bf16.msra.mxu1 %v601_v11  ;;  %v625_v35 = vpack.c.bf16 %v225_v34, %v224_v32  ;;  %v628_v38 = vpack.c.bf16 %v227_v37, %v226_v36  ;;  %v228_v39 = vld [vmem:[#allocation4 + $0x130] sm:$0xff]  ;;  %v229_v40 = vld [vmem:[#allocation4 + $0x138] sm:$0xff]  ;;  %v230_v42 = vld [vmem:[#allocation4 + $0x140] sm:$0xff] }
  0x2f   :  { %603 = vmatprep.subr.bf16.mxu1 %v728_v0  ;;  %623 = vmatpush3.bf16.msra.mxu0 %v622_v33  ;;  %v631_v41 = vpack.c.bf16 %v229_v40, %v228_v39  ;;  %v231_v43 = vld [vmem:[#allocation4 + $0x148] sm:$0xff]  ;;  %v232_v45 = vld [vmem:[#allocation4 + $0x150] sm:$0xff]  ;;  %v233_v46 = vld [vmem:[#allocation4 + $0x158] sm:$0xff] }
  0x30   :  { %624 = vmatprep.subr.bf16.mxu0 %v728_v0  ;;  %v634_v44 = vpack.c.bf16 %v231_v43, %v230_v42  ;;  %v637_v47 = vpack.c.bf16 %v233_v46, %v232_v45  ;;  %v234_v48 = vld [vmem:[#allocation4 + $0x160] sm:$0xff]  ;;  %v235_v49 = vld [vmem:[#allocation4 + $0x168] sm:$0xff]  ;;  %v420_v51 = vld [vmem:[%s832_s2] ss:$0 sm:$0xff] }
  0x31   :  { %v640_v50 = vpack.c.bf16 %v235_v49, %v234_v48  ;;  %v236_v56 = vld [vmem:[#allocation4 + $0x170] sm:$0xff]  ;;  %v237_v57 = vld [vmem:[#allocation4 + $0x178] sm:$0xff]  ;;  %v318_v59 = vld [vmem:[#allocation4 + $0x180] sm:$0xff] }
  0x32   :  { %605 = vmatpush3.bf16.msra.mxu1 %v604_v14  ;;  %v643_v58 = vpack.c.bf16 %v237_v57, %v236_v56  ;;  %v319_v60 = vld [vmem:[#allocation4 + $0x188] sm:$0xff]  ;;  %v320_v61 = vld [vmem:[#allocation4 + $0x190] sm:$0xff]  ;;  %v321_v63 = vld [vmem:[#allocation4 + $0x198] sm:$0xff] }
  0x33   :  { %606 = vmatprep.subr.bf16.mxu1 %v728_v0  ;;  %626 = vmatpush3.bf16.msra.mxu0 %v625_v35  ;;  %v646_v62 = vpack.c.bf16 %v319_v60, %v318_v59  ;;  %v649_v2 = vpack.c.bf16 %v321_v63, %v320_v61  ;;  %v322_v3 = vld [vmem:[#allocation4 + $0x1a0] sm:$0xff]  ;;  %v323_v4 = vld [vmem:[#allocation4 + $0x1a8] sm:$0xff]  ;;  %v325_v6 = vld [vmem:[#allocation4 + $0x1b8] sm:$0xff] }
  0x34   :  { %627 = vmatprep.subr.bf16.mxu0 %v728_v0  ;;  %v652_v5 = vpack.c.bf16 %v323_v4, %v322_v3  ;;  %v326_v8 = vld [vmem:[#allocation4 + $0x1c0] sm:$0xff]  ;;  %v327_v9 = vld [vmem:[#allocation4 + $0x1c8] sm:$0xff]  ;;  %v328_v11 = vld [vmem:[#allocation4 + $0x1d0] sm:$0xff] }
  0x35   :  { %v658_v10 = vpack.c.bf16 %v327_v9, %v326_v8  ;;  %v329_v12 = vld [vmem:[#allocation4 + $0x1d8] sm:$0xff]  ;;  %v330_v14 = vld [vmem:[#allocation4 + $0x1e0] sm:$0xff]  ;;  %v331_v15 = vld [vmem:[#allocation4 + $0x1e8] sm:$0xff] }
  0x36   :  { %608 = vmatpush3.bf16.msra.mxu1 %v607_v17  ;;  %v661_v13 = vpack.c.bf16 %v329_v12, %v328_v11  ;;  %v664_v16 = vpack.c.bf16 %v331_v15, %v330_v14  ;;  %v423_v17 = vld [vmem:[%s832_s2 + $0x1] ss:$0 sm:$0xff]  ;;  %v425_v25 = vld [vmem:[%s832_s2 + $0x2] ss:$0 sm:$0xff] }
  0x37   :  { %609 = vmatprep.subr.bf16.mxu1 %v728_v0  ;;  %629 = vmatpush3.bf16.msra.mxu0 %v628_v38  ;;  %v332_v22 = vld [vmem:[#allocation4 + $0x1f0] sm:$0xff] }
  0x38   :  { %630 = vmatprep.subr.bf16.mxu0 %v728_v0 }
  0x3a   :  { %611 = vmatpush3.bf16.msra.mxu1 %v610_v20 }
  0x3b   :  { %612 = vmatprep.subr.bf16.mxu1 %v728_v0  ;;  %632 = vmatpush3.bf16.msra.mxu0 %v631_v41 }
  0x3c   :  { %633 = vmatprep.subr.bf16.mxu0 %v728_v0 }
  0x3e   :  { %614 = vmatpush3.bf16.msra.mxu1 %v613_v23  ;;  %v333_v23 = vld [vmem:[#allocation4 + $0x1f8] sm:$0xff] }
  0x3f   :  { %615 = vmatprep.subr.bf16.mxu1 %v728_v0  ;;  %635 = vmatpush3.bf16.msra.mxu0 %v634_v44  ;;  %v667_v24 = vpack.c.bf16 %v333_v23, %v332_v22 }
  0x40   :  { %636 = vmatprep.subr.bf16.mxu0 %v728_v0 }
  0x42   :  { %617 = vmatpush3.bf16.msra.mxu1 %v616_v26 }
  0x43   :  { %618 = vmatprep.subr.bf16.mxu1 %v728_v0  ;;  %638 = vmatpush3.bf16.msra.mxu0 %v637_v47 }
  0x44   :  { %639 = vmatprep.subr.bf16.mxu0 %v728_v0 }
  0x46   :  { %620 = vmatpush3.bf16.msra.mxu1 %v619_v29  ;;  %v427_v29 = vld [vmem:[%s832_s2 + $0x3] ss:$0 sm:$0xff] }
  0x47   :  { %645 = vmatprep.subr.bf16.mxu1 %v728_v0  ;;  %641 = vmatpush3.bf16.msra.mxu0 %v640_v50 }
  0x48   :  { %642 = vmatprep.subr.bf16.mxu0 %v728_v0 }
  0x4b   :  { %644 = vmatpush3.bf16.msra.mxu0 %v643_v58 }
  0xff   :  { %v120_v52 = vpop.f32.mrb[0].mxu0 }
 0x100   :  { %v121_v53 = vadd.f32 %v420_v51, %v120_v52  ;;  %v488_v54 = vpop.f32.mrb[1].mxu0 }
 0x102   :  { %v124_v55 = vmax.f32 %v121_v53, 0.0 }
 0x104   :  { %522 = vmatmul.mubr.f32.vlgmr.msra.gmra.mrb[0].mxu1 %v124_v55 }
 0x105   :  { %591 = vmatprep.mubr.msk.f32.mxu1 %vm729_vm0, %v730_v1  ;;  %647 = vmatpush3.bf16.msra.mxu1 %v646_v62  ;;  %v324_v1 = vld [vmem:[#allocation4 + $0x1b0] sm:$0xff] }
 0x106   :  { %648 = vmatprep.subr.bf16.mxu1 %v728_v0  ;;  %v655_v7 = vpack.c.bf16 %v325_v6, %v324_v1 }
 0x109   :  { %650 = vmatpush3.bf16.msra.mxu1 %v649_v2 }
 0x10a   :  { %651 = vmatprep.subr.bf16.mxu1 %v728_v0 }
 0x10d   :  { %653 = vmatpush3.bf16.msra.mxu1 %v652_v5 }
 0x10e   :  { %654 = vmatprep.subr.bf16.mxu1 %v728_v0 }
 0x111   :  { %656 = vmatpush3.bf16.msra.mxu1 %v655_v7 }
 0x112   :  { %657 = vmatprep.subr.bf16.mxu1 %v728_v0 }
 0x115   :  { %659 = vmatpush3.bf16.msra.mxu1 %v658_v10 }
 0x116   :  { %660 = vmatprep.subr.bf16.mxu1 %v728_v0 }
 0x119   :  { %662 = vmatpush3.bf16.msra.mxu1 %v661_v13 }
 0x11a   :  { %663 = vmatprep.subr.bf16.mxu1 %v728_v0 }
 0x11d   :  { %665 = vmatpush3.bf16.msra.mxu1 %v664_v16 }
 0x11e   :  { %666 = vmatprep.subr.bf16.mxu1 %v728_v0 }
 0x121   :  { %668 = vmatpush3.bf16.msra.mxu1 %v667_v24 }
 0x1d7   :  { %v216_v18 = vpop.f32.mrb[0].mxu1 }
 0x1d8   :  { %v217_v19 = vadd.f32 %v423_v17, %v216_v18  ;;  %v523_v20 = vpop.f32.mrb[1].mxu1 }
 0x1da   :  { %v220_v21 = vmax.f32 %v217_v19, 0.0 }
 0x1dc   :  { %557 = vmatmul.mubr.f32.vlgmr.msra.gmra.mrb[2].mxu0 %v220_v21 }
 0x2af   :  { %v312_v26 = vpop.f32.mrb[2].mxu0 }
 0x2b0   :  { %v313_v27 = vadd.f32 %v425_v25, %v312_v26  ;;  %v558_v0 = vpop.f32.mrb[3].mxu0 }
 0x2b2   :  { %v316_v28 = vmax.f32 %v313_v27, 0.0 }
 0x2b4   :  { %592 = vmatmul.mubr.f32.vlgmr.msra.gmra.mrb[2].mxu1 %v316_v28 }
 0x387   :  { %v408_v30 = vpop.f32.mrb[2].mxu1 }
 0x388   :  { %v409_v31 = vadd.f32 %v427_v29, %v408_v30  ;;  %v593_v32 = vpop.f32.mrb[3].mxu1 }
 0x38a   :  { %413 = vst.msk [vmem:[%s833_s3] sm:$0xff] %vm412_vm2, %v409_v31 }
 0x38b   :  { %418 = vsyncpa [#allocation3], 1 }
 0x38c   :  { %419 = vsyncpa [#allocation5], 1 }

</bundles_post_ra>
